<compile_context>
chip_gen: v7x
topology: tpu7x:2x2x1
jax: 0.10.0
libtpu: 0.0.40
codegen_flags: <defaults>
</compile_context>

<pallas_src>
import functools

import jax
import jax.numpy as jnp
from jax import lax
from jax.experimental import pallas as pl
from jax.experimental.pallas import tpu as pltpu

_LANE = 128
_NEG = -1e30  # finite "minus infinity" (avoids inf-inf -> NaN in online softmax)


def _round_up(n, m):
    return ((n + m - 1) // m) * m


def _pick_tile(batch, block_rows, mult):
    """Batch tile: big enough to amortize ~0.35us/step grid overhead, but small
    enough that the grid has >= 2 steps so v7x's 2 TensorCores both get work."""
    return max(mult, _round_up(min(block_rows, pl.cdiv(batch, 2)), mult))


# ----------------------------------------------------------------------------
# Packing
# ----------------------------------------------------------------------------
def pack_actor_params(params):
    """Pack (w1,w2,w3) into ONE zero-padded (rows, 128-lane) buffer and
    (b1,b2,b3) into ONE (1, 3*wpad) row, so the pallas_call streams 3 operands
    and the kernel only takes full-lane, sublane-aligned static views."""
    w1, b1 = params["w1"], params["b1"]
    w2, b2 = params["w2"], params["b2"]
    w3, b3 = params["w3"], params["b3"]
    in_dim, h1 = w1.shape
    h2 = w2.shape[1]
    out_dim = w3.shape[1]

    wpad = _round_up(max(h1, h2, out_dim), _LANE)   # padded fan_out (lane-dense)
    in_rows = _round_up(in_dim, 8)                  # sublane-aligned row offsets

    wp = jnp.zeros((in_rows + 2 * wpad, wpad), jnp.float32)
    wp = wp.at[0:in_dim, 0:h1].set(w1)
    wp = wp.at[in_rows:in_rows + h1, 0:h2].set(w2)
    wp = wp.at[in_rows + wpad:in_rows + wpad + h2, 0:out_dim].set(w3)

    b1p = jnp.zeros((1, wpad), jnp.float32).at[:, 0:h1].set(b1)
    b2p = jnp.zeros((1, wpad), jnp.float32).at[:, 0:h2].set(b2)
    # Padded final-layer logit columns get a huge negative bias so they vanish
    # under the dim=1 softmax (dim=0 never stores them).
    b3p = jnp.full((1, wpad), _NEG, jnp.float32).at[:, 0:out_dim].set(b3)
    bp = jnp.concatenate([b1p, b2p, b3p], axis=1)   # (1, 3*wpad)

    dims = (in_dim, h1, h2, out_dim, wpad, in_rows)
    return wp, bp, dims


# ----------------------------------------------------------------------------
# Kernels
# ----------------------------------------------------------------------------
def _mlp_logits(x_ref, wp_ref, bp_ref, dims):
    """Shared MLP hot path.  Returns (tb, wpad) f32 logits; padded columns hold
    the constant _NEG (from the padded final bias)."""
    in_dim, h1, h2, out_dim, wpad, in_rows = dims
    # Full-lane, sublane-aligned static views of the packed buffers (free).
    w1 = wp_ref[pl.ds(0, in_dim), :]
    w2 = wp_ref[pl.ds(in_rows, wpad), :]
    w3 = wp_ref[pl.ds(in_rows + wpad, wpad), :]
    b1 = bp_ref[:, pl.ds(0, wpad)]
    b2 = bp_ref[:, pl.ds(wpad, wpad)]
    b3 = bp_ref[:, pl.ds(2 * wpad, wpad)]

    x = x_ref[...]
    # MXU matmuls with f32 accumulation; all bias/ReLU work stays f32 (v5e-safe).
    # x may arrive in bf16 (upstream lever halving its HBM stream); weights f32.
    h = jnp.dot(x, w1, preferred_element_type=jnp.float32)
    h = jnp.maximum(h + b1, 0.0)
    h = jnp.dot(h, w2, preferred_element_type=jnp.float32)
    h = jnp.maximum(h + b2, 0.0)
    return jnp.dot(h, w3, preferred_element_type=jnp.float32) + b3


def _actor_fwd_softmax_kernel(x_ref, wp_ref, bp_ref, out_ref, *, dims,
                              softmax_axis):
    """Monolithic (both softmax dims) and batch-tiled dim=1 path."""
    out_dim = dims[3]
    logits = _mlp_logits(x_ref, wp_ref, bp_ref, dims)[:, :out_dim]
    m = jnp.max(logits, axis=softmax_axis, keepdims=True)
    e = jnp.exp(logits - m)
    denom = jnp.sum(e, axis=softmax_axis, keepdims=True)
    out_ref[...] = (e * pl.reciprocal(denom, approx=True)).astype(out_ref.dtype)


def _dim0_pass1_kernel(x_ref, wp_ref, bp_ref, lg_ref, m_ref, l_ref, *, dims,
                       batch):
    """Pass 1 of the tiled dim=0 softmax: per-tile logits + running per-column
    max (m) and sum-exp (l) accumulators (online softmax over the batch axis)."""
    out_dim = dims[3]
    i = pl.program_id(0)
    tb = x_ref.shape[0]

    logits = _mlp_logits(x_ref, wp_ref, bp_ref, dims)[:, :out_dim]
    # Mask padded rows of the last partial tile (uninitialized VMEM).
    row = lax.broadcasted_iota(jnp.int32, (tb, 1), 0)
    valid = (i * tb + row) < batch
    masked = jnp.where(valid, logits, jnp.float32(_NEG))
    lg_ref[...] = masked

    tile_max = jnp.max(masked, axis=0, keepdims=True)

    @pl.when(i == 0)
    def _():
        m_ref[...] = jnp.full(m_ref.shape, _NEG, dtype=m_ref.dtype)
        l_ref[...] = jnp.zeros(l_ref.shape, dtype=l_ref.dtype)

    m_old = m_ref[...]
    m_new = jnp.maximum(m_old, tile_max)
    alpha = jnp.exp(m_old - m_new)
    l_ref[...] = alpha * l_ref[...] + jnp.sum(jnp.exp(masked - m_new),
                                              axis=0, keepdims=True)
    m_ref[...] = m_new


def _dim0_pass2_kernel(lg_ref, m_ref, l_ref, out_ref):
    """Pass 2 of the tiled dim=0 softmax: normalize each batch tile."""
    e = jnp.exp(lg_ref[...] - m_ref[...])
    out_ref[...] = (e * pl.reciprocal(l_ref[...], approx=True)).astype(out_ref.dtype)


# ----------------------------------------------------------------------------
# Wrapper
# ----------------------------------------------------------------------------
def actor_forward(x, wp, bp, dims, softmax_dim=0, *, block_rows=2048,
                  dim0_monolithic_rows=4096, out_dtype=jnp.float32):
    """x: (B, in_dim).  wp/bp/dims from pack_actor_params.  Returns (B, out_dim).

    block_rows: batch tile for the gridded paths; 2048 default is safe on
      v5e/v6e/v7x, sweep 2048-8192 per chip (v5e's lower HBM BW saturates
      earlier, don't blindly reuse a v7x-tuned 8K tile).
    dim0_monolithic_rows: max batch kept as one VMEM block when the softmax
      reduces over the batch axis; 4096 rows (~3 MiB of f32 intermediates)
      fits even v5e's 16 MiB scoped-VMEM default.  Larger batches use the
      tiled two-pass online-softmax path (no VMEM OOM cliff).
    """
    in_dim, h1, h2, out_dim, wpad, in_rows = dims
    B = x.shape[0]
    if softmax_dim not in (0, 1):
        raise ValueError("only softmax_dim in (0, 1) is supported")

    sub32 = (jnp.dtype(x.dtype).itemsize < 4
             or jnp.dtype(out_dtype).itemsize < 4)
    mult = 32 if sub32 else 8   # row-tile multiple (sub-32-bit packs sublanes)

    monolithic = (B <= dim0_monolithic_rows) if softmax_dim == 0 else (B <= 256)
    if monolithic:
        # Whole batch in one VMEM block: cheapest at small B, and the simple
        # path for the cross-batch (dim=0) reduction.
        vmem = pl.BlockSpec(memory_space=pltpu.MemorySpace.VMEM)
        kernel = functools.partial(_actor_fwd_softmax_kernel, dims=dims,
                                   softmax_axis=softmax_dim)
        return pl.pallas_call(
            kernel,
            out_shape=jax.ShapeDtypeStruct((B, out_dim), out_dtype),
            in_specs=[vmem, vmem, vmem],
            out_specs=vmem,
        )(x, wp, bp)

    tb = _pick_tile(B, block_rows, mult)
    nsteps = pl.cdiv(B, tb)
    x_spec = pl.BlockSpec((tb, in_dim), lambda i: (i, 0))
    param_specs = [pl.BlockSpec(wp.shape, lambda i: (0, 0)),
                   pl.BlockSpec(bp.shape, lambda i: (0, 0))]

    if softmax_dim == 1:
        # Row-wise softmax is tile-safe: stream x, keep packed params
        # VMEM-resident, shard the grid across TensorCores on v7x.
        kernel = functools.partial(_actor_fwd_softmax_kernel, dims=dims,
                                   softmax_axis=1)
        return pl.pallas_call(
            kernel,
            out_shape=jax.ShapeDtypeStruct((B, out_dim), out_dtype),
            grid=(nsteps,),
            in_specs=[x_spec] + param_specs,
            out_specs=pl.BlockSpec((tb, out_dim), lambda i: (i, 0)),
            compiler_params=pltpu.CompilerParams(
                dimension_semantics=("parallel",)),
        )(x, wp, bp)

    # softmax_dim == 0, large B: tiled two-pass online softmax over the batch.
    pass1 = functools.partial(_dim0_pass1_kernel, dims=dims, batch=B)
    logits, m, l = pl.pallas_call(
        pass1,
        out_shape=(jax.ShapeDtypeStruct((B, out_dim), jnp.float32),
                   jax.ShapeDtypeStruct((1, out_dim), jnp.float32),
                   jax.ShapeDtypeStruct((1, out_dim), jnp.float32)),
        grid=(nsteps,),
        in_specs=[x_spec] + param_specs,
        out_specs=(pl.BlockSpec((tb, out_dim), lambda i: (i, 0)),
                   pl.BlockSpec((1, out_dim), lambda i: (0, 0)),
                   pl.BlockSpec((1, out_dim), lambda i: (0, 0))),
        compiler_params=pltpu.CompilerParams(
            dimension_semantics=("arbitrary",)),   # sequential accumulation
    )(x, wp, bp)

    return pl.pallas_call(
        _dim0_pass2_kernel,
        out_shape=jax.ShapeDtypeStruct((B, out_dim), out_dtype),
        grid=(nsteps,),
        in_specs=[pl.BlockSpec((tb, out_dim), lambda i: (i, 0)),
                  pl.BlockSpec((1, out_dim), lambda i: (0, 0)),
                  pl.BlockSpec((1, out_dim), lambda i: (0, 0))],
        out_specs=pl.BlockSpec((tb, out_dim), lambda i: (i, 0)),
        compiler_params=pltpu.CompilerParams(
            dimension_semantics=("parallel",)),
    )(logits, m, l)


# ----------------------------------------------------------------------------
# Params / reference
# ----------------------------------------------------------------------------
def init_actor_params(key, in_dim, hid1, hid2, out_dim):
    """Deterministic synthetic init (uniform like torch.nn.Linear default)."""
    keys = jax.random.split(key, 6)

    def linear_init(kw, kb, fan_in, fan_out):
        bound = 1.0 / jnp.sqrt(fan_in)
        # stored as (fan_in, fan_out) == torch weight (out,in) transposed
        w = jax.random.uniform(kw, (fan_in, fan_out), jnp.float32, -bound, bound)
        b = jax.random.uniform(kb, (1, fan_out), jnp.float32, -bound, bound)
        return w, b

    w1, b1 = linear_init(keys[0], keys[1], in_dim, hid1)
    w2, b2 = linear_init(keys[2], keys[3], hid1, hid2)
    w3, b3 = linear_init(keys[4], keys[5], hid2, out_dim)
    return {"w1": w1, "b1": b1, "w2": w2, "b2": b2, "w3": w3, "b3": b3}


def _reference_forward(x, params, softmax_dim=0):
    h = jnp.maximum(x @ params["w1"] + params["b1"], 0.0)
    h = jnp.maximum(h @ params["w2"] + params["b2"], 0.0)
    logits = h @ params["w3"] + params["b3"]
    return jax.nn.softmax(logits, axis=softmax_dim)


if __name__ == "__main__":
    # args = {'in_dim': 32, 'actor_hid_dim_1': 64, 'actor_hid_dim_2': 32, 'out_dim': 16}
    in_dim, hid1, hid2, out_dim = 32, 64, 32, 16

    key = jax.random.PRNGKey(0)
    k_x0, k_x1, k_x2, k_p = jax.random.split(key, 4)
    params = init_actor_params(k_p, in_dim, hid1, hid2, out_dim)
    wp, bp, dims = pack_actor_params(params)

    # ---- path 1: torch default softmax_dim=0 (over batch), small B -> monolithic
    B0 = 8
    x0 = jax.random.normal(k_x0, (B0, in_dim), jnp.float32)
    prob0 = jax.block_until_ready(actor_forward(x0, wp, bp, dims, softmax_dim=0))
    ref0 = _reference_forward(x0, params, softmax_dim=0)
    assert prob0.shape == (B0, out_dim)
    assert jnp.allclose(prob0, ref0, atol=2e-3, rtol=2e-3), "dim=0 monolithic mismatch"
    assert jnp.allclose(jnp.sum(prob0, axis=0), jnp.ones((out_dim,)), atol=5e-3)

    # ---- path 2: softmax_dim=0, larger B -> tiled two-pass online softmax ----
    B1 = 600
    x1 = jax.random.normal(k_x1, (B1, in_dim), jnp.float32)
    prob1 = jax.block_until_ready(
        actor_forward(x1, wp, bp, dims, softmax_dim=0, block_rows=256,
                      dim0_monolithic_rows=256))   # force the tiled path
    ref1_d0 = _reference_forward(x1, params, softmax_dim=0)
    assert prob1.shape == (B1, out_dim)
    assert jnp.allclose(prob1, ref1_d0, atol=2e-3, rtol=2e-3), "dim=0 tiled mismatch"
    assert jnp.allclose(jnp.sum(prob1, axis=0), jnp.ones((out_dim,)), atol=5e-3)

    # ---- path 3: softmax_dim=1, gridded (>=2 steps for v7x megacore) ---------
    prob2 = jax.block_until_ready(actor_forward(x1, wp, bp, dims, softmax_dim=1))
    ref1_d1 = _reference_forward(x1, params, softmax_dim=1)
    assert prob2.shape == (B1, out_dim)
    assert jnp.allclose(prob2, ref1_d1, atol=2e-3, rtol=2e-3), "dim=1 mismatch"
    assert jnp.allclose(jnp.sum(prob2, axis=1), jnp.ones((B1,)), atol=5e-3)

    # ---- path 4: bf16 x from upstream + bf16 output (HBM-bytes lever) --------
    B2 = 512
    x2 = jax.random.normal(k_x2, (B2, in_dim), jnp.float32)
    prob3 = jax.block_until_ready(
        actor_forward(x2.astype(jnp.bfloat16), wp, bp, dims, softmax_dim=1,
                      out_dtype=jnp.bfloat16))
    ref2_d1 = _reference_forward(x2, params, softmax_dim=1)
    assert prob3.shape == (B2, out_dim)
    assert jnp.allclose(prob3.astype(jnp.float32), ref2_d1,
                        atol=3e-2, rtol=5e-2), "bf16 mismatch"

    print("KERNEL_OK")
</pallas_src>

<mosaic_0001>
module attributes {stable_mosaic.version = 11 : i64} {
  func.func @_actor_fwd_softmax_kernel(%arg0: memref<8x32xf32, #tpu.memory_space<vmem>>, %arg1: memref<288x128xf32, #tpu.memory_space<vmem>>, %arg2: memref<1x384xf32, #tpu.memory_space<vmem>>, %arg3: memref<8x16xf32, #tpu.memory_space<vmem>>) attributes {dimension_semantics = [], scalar_prefetch = 0 : i64, scratch_operands = 0 : i64, tpu.core_type = #tpu.core_type<tc>} {
    %c0 = arith.constant 0 : index
    %c0_0 = arith.constant 0 : index
    %0 = vector.load %arg1[%c0, %c0_0] : memref<288x128xf32, #tpu.memory_space<vmem>>, vector<32x128xf32>
    %c32 = arith.constant 32 : index
    %c0_1 = arith.constant 0 : index
    %1 = vector.load %arg1[%c32, %c0_1] : memref<288x128xf32, #tpu.memory_space<vmem>>, vector<128x128xf32>
    %c160 = arith.constant 160 : index
    %c0_2 = arith.constant 0 : index
    %2 = vector.load %arg1[%c160, %c0_2] : memref<288x128xf32, #tpu.memory_space<vmem>>, vector<128x128xf32>
    %c0_3 = arith.constant 0 : index
    %c0_4 = arith.constant 0 : index
    %3 = vector.load %arg2[%c0_3, %c0_4] : memref<1x384xf32, #tpu.memory_space<vmem>>, vector<1x128xf32>
    %c0_5 = arith.constant 0 : index
    %c128 = arith.constant 128 : index
    %4 = vector.load %arg2[%c0_5, %c128] : memref<1x384xf32, #tpu.memory_space<vmem>>, vector<1x128xf32>
    %c0_6 = arith.constant 0 : index
    %c256 = arith.constant 256 : index
    %5 = vector.load %arg2[%c0_6, %c256] : memref<1x384xf32, #tpu.memory_space<vmem>>, vector<1x128xf32>
    %c0_7 = arith.constant 0 : index
    %c0_8 = arith.constant 0 : index
    %6 = vector.load %arg0[%c0_7, %c0_8] : memref<8x32xf32, #tpu.memory_space<vmem>>, vector<8x32xf32>
    %cst = arith.constant dense<0.000000e+00> : vector<8x128xf32>
    %7 = tpu.matmul %6, %0, %cst {dimension_numbers = #tpu.dot_dimension_numbers<[1], [0], [0], [1], [0, 0, 1, 1], [], []>} : vector<8x32xf32>, vector<32x128xf32>, vector<8x128xf32> -> vector<8x128xf32>
    %8 = vector.broadcast %3 : vector<1x128xf32> to vector<8x128xf32>
    %9 = arith.addf %7, %8 : vector<8x128xf32>
    %cst_9 = arith.constant 0.000000e+00 : f32
    %10 = vector.broadcast %cst_9 : f32 to vector<8x128xf32>
    %11 = arith.maximumf %9, %10 : vector<8x128xf32>
    %cst_10 = arith.constant dense<0.000000e+00> : vector<8x128xf32>
    %12 = tpu.matmul %11, %1, %cst_10 {dimension_numbers = #tpu.dot_dimension_numbers<[1], [0], [0], [1], [0, 0, 1, 1], [], []>} : vector<8x128xf32>, vector<128x128xf32>, vector<8x128xf32> -> vector<8x128xf32>
    %13 = vector.broadcast %4 : vector<1x128xf32> to vector<8x128xf32>
    %14 = arith.addf %12, %13 : vector<8x128xf32>
    %cst_11 = arith.constant 0.000000e+00 : f32
    %15 = vector.broadcast %cst_11 : f32 to vector<8x128xf32>
    %16 = arith.maximumf %14, %15 : vector<8x128xf32>
    %cst_12 = arith.constant dense<0.000000e+00> : vector<8x128xf32>
    %17 = tpu.matmul %16, %2, %cst_12 {dimension_numbers = #tpu.dot_dimension_numbers<[1], [0], [0], [1], [0, 0, 1, 1], [], []>} : vector<8x128xf32>, vector<128x128xf32>, vector<8x128xf32> -> vector<8x128xf32>
    %18 = vector.broadcast %5 : vector<1x128xf32> to vector<8x128xf32>
    %19 = arith.addf %17, %18 : vector<8x128xf32>
    %20 = vector.extract_strided_slice %19 {offsets = [0, 0], sizes = [8, 16], strides = [1, 1]} : vector<8x128xf32> to vector<8x16xf32>
    %cst_13 = arith.constant dense<0xFF800000> : vector<16xf32>
    %21 = vector.multi_reduction <maximumf>, %20, %cst_13 [0] : vector<8x16xf32> to vector<16xf32>
    %22 = vector.shape_cast %21 : vector<16xf32> to vector<1x16xf32>
    %23 = vector.broadcast %22 : vector<1x16xf32> to vector<8x16xf32>
    %24 = arith.subf %20, %23 : vector<8x16xf32>
    %25 = math.exp %24 : vector<8x16xf32>
    %cst_14 = arith.constant dense<0.000000e+00> : vector<16xf32>
    %26 = vector.multi_reduction <add>, %25, %cst_14 [0] : vector<8x16xf32> to vector<16xf32>
    %27 = vector.shape_cast %26 : vector<16xf32> to vector<1x16xf32>
    %28 = tpu.reciprocal %27 {approx = true} : vector<1x16xf32> -> vector<1x16xf32>
    %29 = vector.broadcast %28 : vector<1x16xf32> to vector<8x16xf32>
    %30 = arith.mulf %25, %29 : vector<8x16xf32>
    %c0_15 = arith.constant 0 : index
    %c0_16 = arith.constant 0 : index
    %31 = vector.load %arg3[%c0_15, %c0_16] : memref<8x16xf32, #tpu.memory_space<vmem>>, vector<8x16xf32>
    tpu.vector_store %arg3[%c0_15, %c0_16], %30 {strides = array<i32>} : memref<8x16xf32, #tpu.memory_space<vmem>>, vector<8x16xf32>,
    return
  }
}

</mosaic_0001>

<bundles_post_ra>
// kernel: tpu_custom_call.1
= control target key start
LH: loop header
LB: loop body
LE: loop exit
PB: predicated region body
PF: predicated region fallthrough
CT: control target
= control target key end

     0   :  { %8 = vsyncpa [#allocation3], 0  ;;  %s718_s0 = inlined_call_operand.hbm [shape: f32[8,32], index: 0, kind: input, shape index: {}]   ;;  %s719_s1 = inlined_call_operand.hbm [shape: f32[288,128], index: 1, kind: input, shape index: {}]   ;;  %s720_s2 = inlined_call_operand.vmem [shape: f32[1,384], index: 2, kind: input, shape index: {}]   ;;  %s721_s3 = inlined_call_operand.hbm [shape: f32[8,16], index: 3, kind: output, shape index: {}]  }
   0x1   :  { %9 = vsyncpa [#allocation6], 0 }
   0x2   :  { %10 = vsyncpa [#allocation4], 0  ;;  %s614_s12 = smov [#allocation2]   ;;  %s615_s14 = smov [#allocation5]  }
   0x3   :  { %s17_s13 = sshll.u32 %s614_s12, 4  ;;  %s26_s15 = sshll.u32 %s615_s14, 4  ;;  %s18_s13 = int_to_ptr.vmem [resolvable:$true] %s17_s13  ;;  %s642_s15 = int_to_ptr.vmem [resolvable:$true] %s26_s15 }
   0x4   :  { %s542_s18 = scalar_lea.hbm %s718_s0, 128 }
   0x5   :  { %p543_p0 = scmp.ne.s32.totalorder %s718_s0, %s542_s18  ;;  %p546_p1 = scmp.lt.u32.totalorder %s542_s18, %s718_s0 }
   0x7   :  { %p548_p2 = pnand %p546_p1, %p543_p0 }
   0x9   :  { %551 = shalt.err (!%p548_p2)
}
   0xa   :  { %s552_s23 = scalar_lea.vmem %s18_s13, 128  ;;  %p557_p4 = scmp.lt.s32.totalorder %s18_s13, %s18_s13 }
   0xb   :  { %p553_p3 = scmp.ne.s32.totalorder %s18_s13, %s552_s23  ;;  %p558_p5 = scmp.lt.s32.totalorder %s552_s23, %s552_s23 }
   0xd   :  { %p559_p6 = por %p558_p5, %p557_p4 }
   0xf   :  { %p560_p7 = pnand %p559_p6, %p553_p3 }
  0x11   :  { %563 = shalt.err (!%p560_p7)
}
  0x12   :  { %20 = dma.hbm_to_vmem [thread:$0]  %s718_s0, 128, %s18_s13, [#allocation3]  }
  0x13   :  { %s564_s28 = scalar_lea.hbm %s719_s1, 4608 }
  0x14   :  { %p565_p8 = scmp.ne.s32.totalorder %s719_s1, %s564_s28  ;;  %p568_p9 = scmp.lt.u32.totalorder %s564_s28, %s719_s1 }
  0x16   :  { %p570_p10 = pnand %p568_p9, %p565_p8 }
  0x18   :  { %573 = shalt.err (!%p570_p10)
}
  0x19   :  { %s574_s6 = scalar_lea.vmem %s642_s15, 4608  ;;  %p579_p12 = scmp.lt.s32.totalorder %s642_s15, %s642_s15 }
  0x1a   :  { %p575_p11 = scmp.ne.s32.totalorder %s642_s15, %s574_s6  ;;  %p580_p13 = scmp.lt.s32.totalorder %s574_s6, %s574_s6 }
  0x1c   :  { %p581_p0 = por %p580_p13, %p579_p12 }
  0x1e   :  { %p582_p1 = pnand %p581_p0, %p575_p11 }
  0x20   :  { %585 = shalt.err (!%p582_p1)
}
  0x21   :  { %s616_s0 = smov 128   ;;  %s617_s7 = smov 8  }
  0x22   :  { %32 = dma.hbm_to_vmem [thread:$0]  %s719_s1, 4608, %s642_s15, [#allocation6], %s616_s0, %s616_s0, %s617_s7  }
  0x23   :  { %608 = dma.done.wait [#allocation3], 128  }
  0x24   :  { %609 = vsyncadd [#allocation3], 4294967168 }
  0x25   :  { %610 = dma.done.wait [#allocation6], 4608  }
  0x26   :  { %611 = vsyncadd [#allocation6], 4294962688  ;;  %v618_v0 = vmov 0.0|0.0   ;;  %vm619_vm0 = vmmov 0   ;;  %v620_v1 = vmov 0.0   ;;  %v41_v2 = vld [vmem:[#allocation5] sm:$0xff] }
  0x27   :  { %476 = vmatprep.subr.bf16.mxu0 %v618_v0  ;;  %403 = vmatprep.mubr.msk.f32.mxu0 %vm619_vm0, %v620_v1  ;;  %v42_v3 = vld [vmem:[#allocation5 + $0x8] sm:$0xff]  ;;  %v43_v4 = vld [vmem:[#allocation5 + $0x10] sm:$0xff]  ;;  %v44_v6 = vld [vmem:[#allocation5 + $0x18] sm:$0xff]  ;;  %vm87_vm1 = vcmask 261120   ;;  %vm315_vm2 = vcmask 130048  }
  0x28   :  { %482 = vmatprep.subr.bf16.mxu1 %v618_v0  ;;  %438 = vmatprep.mubr.msk.f32.mxu1 %vm619_vm0, %v620_v1  ;;  %v477_v5 = vpack.c.bf16 %v42_v3, %v41_v2  ;;  %v45_v7 = vld [vmem:[#allocation5 + $0x20] sm:$0xff]  ;;  %v46_v8 = vld [vmem:[#allocation5 + $0x28] sm:$0xff]  ;;  %v47_v9 = vld [vmem:[#allocation5 + $0x30] sm:$0xff]  ;;  %v480_v11 = vpack.c.bf16 %v44_v6, %v43_v4 }
  0x29   :  { %v48_v10 = vld [vmem:[#allocation5 + $0x38] sm:$0xff]  ;;  %v483_v12 = vpack.c.bf16 %v46_v8, %v45_v7  ;;  %v49_v14 = vld [vmem:[#allocation5 + $0x40] sm:$0xff]  ;;  %v50_v15 = vld [vmem:[#allocation5 + $0x48] sm:$0xff] }
  0x2a   :  { %478 = vmatpush3.bf16.msra.mxu0 %v477_v5  ;;  %v486_v13 = vpack.c.bf16 %v48_v10, %v47_v9  ;;  %v80_v16 = vld [vmem:[#allocation2] sm:$0xff]  ;;  %v489_v17 = vpack.c.bf16 %v50_v15, %v49_v14  ;;  %v51_v18 = vld [vmem:[#allocation5 + $0x50] sm:$0xff]  ;;  %v53_v21 = vld [vmem:[#allocation5 + $0x60] sm:$0xff] }
  0x2b   :  { %479 = vmatprep.subr.bf16.mxu0 %v618_v0  ;;  %484 = vmatpush3.bf16.msra.mxu1 %v483_v12  ;;  %v52_v19 = vld [vmem:[#allocation5 + $0x58] sm:$0xff]  ;;  %v54_v22 = vld [vmem:[#allocation5 + $0x68] sm:$0xff]  ;;  %v55_v24 = vld [vmem:[#allocation5 + $0x70] sm:$0xff] }
  0x2c   :  { %485 = vmatprep.subr.bf16.mxu1 %v618_v0  ;;  %v492_v20 = vpack.c.bf16 %v52_v19, %v51_v18  ;;  %v495_v23 = vpack.c.bf16 %v54_v22, %v53_v21  ;;  %v56_v25 = vld [vmem:[#allocation5 + $0x78] sm:$0xff]  ;;  %v57_v27 = vld [vmem:[#allocation5 + $0x80] sm:$0xff]  ;;  %v58_v28 = vld [vmem:[#allocation5 + $0x88] sm:$0xff] }
  0x2d   :  { %v498_v26 = vpack.c.bf16 %v56_v25, %v55_v24  ;;  %v501_v29 = vpack.c.bf16 %v58_v28, %v57_v27  ;;  %v59_v30 = vld [vmem:[#allocation5 + $0x90] sm:$0xff]  ;;  %v60_v31 = vld [vmem:[#allocation5 + $0x98] sm:$0xff]  ;;  %v61_v33 = vld [vmem:[#allocation5 + $0xa0] sm:$0xff] }
  0x2e   :  { %481 = vmatpush3.bf16.msra.mxu0 %v480_v11  ;;  %v504_v32 = vpack.c.bf16 %v60_v31, %v59_v30  ;;  %v62_v34 = vld [vmem:[#allocation5 + $0xa8] sm:$0xff]  ;;  %v63_v35 = vld [vmem:[#allocation5 + $0xb0] sm:$0xff]  ;;  %v64_v37 = vld [vmem:[#allocation5 + $0xb8] sm:$0xff] }
  0x2f   :  { %506 = vmatprep.subr.bf16.mxu0 %v618_v0  ;;  %487 = vmatpush3.bf16.msra.mxu1 %v486_v13  ;;  %v507_v36 = vpack.c.bf16 %v62_v34, %v61_v33  ;;  %v510_v38 = vpack.c.bf16 %v64_v37, %v63_v35  ;;  %v65_v39 = vld [vmem:[#allocation5 + $0xc0] sm:$0xff]  ;;  %v66_v40 = vld [vmem:[#allocation5 + $0xc8] sm:$0xff]  ;;  %v67_v42 = vld [vmem:[#allocation5 + $0xd0] sm:$0xff] }
  0x30   :  { %488 = vmatprep.subr.bf16.mxu1 %v618_v0  ;;  %v513_v41 = vpack.c.bf16 %v66_v40, %v65_v39  ;;  %v68_v43 = vld [vmem:[#allocation5 + $0xd8] sm:$0xff]  ;;  %v69_v45 = vld [vmem:[#allocation5 + $0xe0] sm:$0xff]  ;;  %v70_v46 = vld [vmem:[#allocation5 + $0xe8] sm:$0xff] }
  0x31   :  { %404 = vmatmul.mubr.msk.f32.vlgmr.msra.gmra.mrb[0].mxu0 %vm87_vm1, %v80_v16  ;;  %v516_v44 = vpack.c.bf16 %v68_v43, %v67_v42  ;;  %v519_v47 = vpack.c.bf16 %v70_v46, %v69_v45  ;;  %v71_v48 = vld [vmem:[#allocation5 + $0xf0] sm:$0xff]  ;;  %v72_v49 = vld [vmem:[#allocation5 + $0xf8] sm:$0xff]  ;;  %v73_v51 = vld [vmem:[#allocation5 + $0x100] sm:$0xff] }
  0x32   :  { %473 = vmatprep.mubr.msk.f32.mxu0 %vm619_vm0, %v620_v1  ;;  %508 = vmatpush3.bf16.msra.mxu0 %v507_v36  ;;  %v522_v50 = vpack.c.bf16 %v72_v49, %v71_v48  ;;  %v74_v52 = vld [vmem:[#allocation5 + $0x108] sm:$0xff]  ;;  %v352_v54 = vld [vmem:[%s720_s2] ss:$0 sm:$0xff]  ;;  %v75_v59 = vld [vmem:[#allocation5 + $0x110] sm:$0xff] }
  0x33   :  { %490 = vmatpush3.bf16.msra.mxu1 %v489_v17  ;;  %509 = vmatprep.subr.bf16.mxu0 %v618_v0  ;;  %v525_v53 = vpack.c.bf16 %v74_v52, %v73_v51  ;;  %v76_v60 = vld [vmem:[#allocation5 + $0x118] sm:$0xff] }
  0x34   :  { %491 = vmatprep.subr.bf16.mxu1 %v618_v0  ;;  %v528_v61 = vpack.c.bf16 %v76_v60, %v75_v59  ;;  %v354_v62 = vld [vmem:[%s720_s2 + $0x1] ss:$0 sm:$0xff]  ;;  %v355_v3 = vld [vmem:[%s720_s2 + $0x2] ss:$0 sm:$0xff]  ;;  %s621_s2 = smov [#allocation7]  }
  0x35   :  { %s342_s15 = sshll.u32 %s621_s2, 4  ;;  %s343_s15 = int_to_ptr.vmem [resolvable:$true] %s342_s15 }
  0x36   :  { %511 = vmatpush3.bf16.msra.mxu0 %v510_v38  ;;  %s586_s16 = scalar_lea.vmem %s343_s15, 128  ;;  %p591_p3 = scmp.lt.s32.totalorder %s343_s15, %s343_s15 }
  0x37   :  { %493 = vmatpush3.bf16.msra.mxu1 %v492_v20  ;;  %512 = vmatprep.subr.bf16.mxu0 %v618_v0  ;;  %p587_p2 = scmp.ne.s32.totalorder %s343_s15, %s586_s16  ;;  %p592_p4 = scmp.lt.s32.totalorder %s586_s16, %s586_s16 }
  0x38   :  { %494 = vmatprep.subr.bf16.mxu1 %v618_v0 }
  0x39   :  { %p593_p5 = por %p592_p4, %p591_p3 }
  0x3a   :  { %514 = vmatpush3.bf16.msra.mxu0 %v513_v41 }
  0x3b   :  { %496 = vmatpush3.bf16.msra.mxu1 %v495_v23  ;;  %515 = vmatprep.subr.bf16.mxu0 %v618_v0  ;;  %p594_p6 = pnand %p593_p5, %p587_p2 }
  0x3c   :  { %497 = vmatprep.subr.bf16.mxu1 %v618_v0 }
  0x3e   :  { %517 = vmatpush3.bf16.msra.mxu0 %v516_v44 }
  0x3f   :  { %499 = vmatpush3.bf16.msra.mxu1 %v498_v26  ;;  %518 = vmatprep.subr.bf16.mxu0 %v618_v0 }
  0x40   :  { %500 = vmatprep.subr.bf16.mxu1 %v618_v0 }
  0x42   :  { %520 = vmatpush3.bf16.msra.mxu0 %v519_v47 }
  0x43   :  { %502 = vmatpush3.bf16.msra.mxu1 %v501_v29  ;;  %521 = vmatprep.subr.bf16.mxu0 %v618_v0 }
  0x44   :  { %503 = vmatprep.subr.bf16.mxu1 %v618_v0 }
  0x46   :  { %523 = vmatpush3.bf16.msra.mxu0 %v522_v50 }
  0x47   :  { %505 = vmatpush3.bf16.msra.mxu1 %v504_v32  ;;  %524 = vmatprep.subr.bf16.mxu0 %v618_v0 }
  0x4a   :  { %526 = vmatpush3.bf16.msra.mxu0 %v525_v53 }
  0x4b   :  { %527 = vmatprep.subr.bf16.mxu0 %v618_v0 }
  0x4e   :  { %529 = vmatpush3.bf16.msra.mxu0 %v528_v61 }
 0x104   :  { %v157_v55 = vpop.f32.mrb[0].mxu0 }
 0x105   :  { %v158_v56 = vadd.f32 %v352_v54, %v157_v55  ;;  %v405_v57 = vpop.f32.mrb[1].mxu0 }
 0x107   :  { %v161_v58 = vmax.f32 %v158_v56, 0.0 }
 0x109   :  { %439 = vmatmul.mubr.f32.vlgmr.msra.gmra.mrb[0].mxu1 %v161_v58 }
 0x1dc   :  { %v234_v63 = vpop.f32.mrb[0].mxu1 }
 0x1dd   :  { %v235_v1 = vadd.f32 %v354_v62, %v234_v63  ;;  %v440_v0 = vpop.f32.mrb[1].mxu1 }
 0x1df   :  { %v238_v2 = vmax.f32 %v235_v1, 0.0 }
 0x1e1   :  { %474 = vmatmul.mubr.f32.vlgmr.msra.gmra.mrb[2].mxu0 %v238_v2 }
 0x2b4   :  { %v311_v4 = vpop.f32.mrb[2].mxu0 }
 0x2b5   :  { %v312_v5 = vadd.f32 %v355_v3, %v311_v4  ;;  %v475_v6 = vpop.f32.mrb[3].mxu0 }
 0x2b7   :  { %v316_v7 = vsel %vm315_vm2, %v312_v5, -inf }
 0x2b8   :  { %v317_v8 = vrot.slane %v316_v7, 4 }
 0x2ba   :  { %v318_v9 = vmax.f32 %v316_v7, %v317_v8 }
 0x2bc   :  { %v319_v10 = vrot.slane %v318_v9, 2 }
 0x2be   :  { %v320_v11 = vmax.f32 %v318_v9, %v319_v10 }
 0x2c0   :  { %v321_v12 = vrot.slane %v320_v11, 1 }
 0x2c2   :  { %v322_v13 = vmax.f32 %v320_v11, %v321_v12 }
 0x2c4   :  { %v323_v14 = vsub.f32 %v312_v5, %v322_v13 }
 0x2c6   :  { %v324_v15 = vmul.f32 1.442695, %v323_v14 }
 0x2c8   :  { %538 = vpow2.f32 %v324_v15 }
 0x2d2   :  { %v539_v16 = vpop.eup %538 }
 0x2d3   :  { %v326_v17 = vsel %vm315_vm2, %v539_v16, 0.0 }
 0x2d4   :  { %v327_v18 = vrot.slane %v326_v17, 4 }
 0x2d6   :  { %v328_v19 = vadd.f32 %v327_v18, %v326_v17 }
 0x2d8   :  { %v329_v20 = vrot.slane %v328_v19, 2 }
 0x2da   :  { %v330_v21 = vadd.f32 %v329_v20, %v328_v19 }
 0x2dc   :  { %v331_v22 = vrot.slane %v330_v21, 1 }
 0x2de   :  { %v332_v23 = vadd.f32 %v331_v22, %v330_v21 }
 0x2e0   :  { %540 = vrcp.f32 %v332_v23 }
 0x2ea   :  { %v541_v24 = vpop.eup %540 }
 0x2eb   :  { %v334_v25 = vmul.f32 %v541_v24, %v539_v16 }
 0x2ed   :  { %335 = vst.msk [vmem:[#allocation7] sm:$0xff] %vm315_vm2, %v334_v25 }
 0x2ee   :  { %597 = shalt.err (!%p594_p6)
}
 0x2ef   :  { %s598_s19 = scalar_lea.hbm %s721_s3, 128 }
 0x2f0   :  { %p599_p7 = scmp.ne.s32.totalorder %s721_s3, %s598_s19  ;;  %p602_p8 = scmp.lt.u32.totalorder %s598_s19, %s721_s3 }
 0x2f2   :  { %p604_p9 = pnand %p602_p8, %p599_p7 }
 0x2f4   :  { %607 = shalt.err (!%p604_p9)
}
 0x2f5   :  { %345 = dma.vmem_to_hbm [thread:$0]  %s343_s15, 128, %s721_s3, [#allocation4]  }
 0x2f6   :  { %612 = dma.done.wait [#allocation4], 128  }
 0x2f7   :  { %613 = vsyncadd [#allocation4], 4294967168 }
 0x2f8   :  { %349 = vsyncpa [#allocation3], 1 }
 0x2f9   :  { %350 = vsyncpa [#allocation6], 1 }
 0x2fa   :  { %351 = vsyncpa [#allocation4], 1 }

</bundles_post_ra>
